<compile_context>
chip_gen: v7x
topology: tpu7x:2x2x1
jax: 0.10.0
libtpu: 0.0.40
codegen_flags: <defaults>
</compile_context>

<pallas_src>
import math

import jax
import jax.numpy as jnp
import numpy as np
from jax.experimental import pallas as pl
from jax.experimental.pallas import tpu as pltpu

_LANES = 128
_HALF_PI = float(np.pi / 2.0)

# Explicit scoped-VMEM limit requested from Mosaic.  32 MiB is the v6e/v7x default and
# is safely below physical VMEM on all three generations (128/128/64 MiB); on v5e it
# raises the 16 MiB scoped default so the larger blocks below are legal.
_VMEM_LIMIT_BYTES = 32 * 1024 * 1024
# Per-grid-step live-bytes budget (leave headroom under the limit for constants,
# compiler scratch and pipelining bookkeeping).
_VMEM_WORKING_BUDGET = 24 * 1024 * 1024
# Split the grid into >= this many steps (so v7x's two TCs both get work), but only
# when each resulting block still has at least this many rows (~1 MiB packed blocks),
# so single-TC chips don't pay extra per-step overhead at small/medium B.
_MIN_GRID_STEPS = 4
_MIN_SPLIT_ROWS = 2048


def _round_up(n: int, m: int) -> int:
    return ((n + m - 1) // m) * m


def _pick_tile_rows(total_rows: int, out_row_bytes: int, in_row_bytes: int,
                    work_row_bytes: int, row_align: int,
                    max_tile_rows: int | None = None) -> int:
    """Row tile from the VMEM working-set budget (multiple of row_align, or full extent)."""
    # Live bytes per row per grid step: 2x output block (double-buffered) +
    # 2x input block (double-buffered) + ~2 block-sized f32 temporaries (emb, sin).
    per_row = 2 * out_row_bytes + 2 * in_row_bytes + 2 * work_row_bytes
    cap = max(row_align, (_VMEM_WORKING_BUDGET // max(per_row, 1)) // row_align * row_align)
    if max_tile_rows is not None:
        cap = max(row_align, min(cap, (max_tile_rows // row_align) * row_align))
    # Give the grid >= _MIN_GRID_STEPS steps when blocks stay comfortably large
    # (dual-TensorCore sharding on v7x; overlap for the pipeline).
    split = _round_up(pl.cdiv(total_rows, _MIN_GRID_STEPS), row_align)
    tile = cap
    if split >= _MIN_SPLIT_ROWS:
        tile = min(tile, split)
    if total_rows <= tile:
        return total_rows        # block == full array extent: always a legal block shape
    return tile                  # multiple of row_align


def _tree_sum(terms):
    """Tree-shaped sum (shorter dependence chain than a serial fold)."""
    while len(terms) > 1:
        nxt = [terms[i] + terms[i + 1] for i in range(0, len(terms) - 1, 2)]
        if len(terms) % 2:
            nxt.append(terms[-1])
        terms = nxt
    return terms[0]


# --------------------------- kernels ---------------------------

def _packed_fold_kernel(x_ref, f_ref, p_ref, o_ref):
    """Lane-dense packed path, single phase-folded sin.

    x_ref: (tile, k) f32 timesteps (k logical rows per packed 128-lane row).
    f_ref: (k, 128) f32; row j holds [freqs, freqs] in lanes [j*dim,(j+1)*dim), 0 elsewhere.
    p_ref: (1, 128) f32; pi/2 on cos lanes, 0 on sin lanes.
    o_ref: (tile, 128).
    """
    xb = x_ref[...]
    k = xb.shape[-1]
    emb = _tree_sum([xb[:, j:j + 1] * f_ref[j:j + 1, :] for j in range(k)])  # exact f32
    o_ref[...] = jnp.sin(emb + p_ref[...]).astype(o_ref.dtype)


def _packed_exact_kernel(x_ref, f_ref, m_ref, o_ref):
    """Lane-dense packed path, exact sin/cos (both evaluated, lane-selected)."""
    xb = x_ref[...]
    k = xb.shape[-1]
    emb = _tree_sum([xb[:, j:j + 1] * f_ref[j:j + 1, :] for j in range(k)])
    out = jnp.where(m_ref[...] > 0.5, jnp.sin(emb), jnp.cos(emb))
    o_ref[...] = out.astype(o_ref.dtype)


def _plain_fold_kernel(x_ref, f_ref, p_ref, o_ref):
    """Plain path (dim >= 128 or non-dividing dim), phase-folded single sin, one store."""
    emb = x_ref[...] * f_ref[...] + p_ref[...]        # (tile, dim)
    o_ref[...] = jnp.sin(emb).astype(o_ref.dtype)


def _plain_exact_kernel(x_ref, f_ref, o_ref):
    """Plain path, exact sin/cos, two sliced stores (vreg-aligned when half % 128 == 0)."""
    half = f_ref.shape[-1]
    emb = x_ref[...] * f_ref[...]                     # (tile, half), exact f32 (VPU)
    o_ref[:, :half] = jnp.sin(emb).astype(o_ref.dtype)
    o_ref[:, half:] = jnp.cos(emb).astype(o_ref.dtype)


# --------------------------- wrapper ---------------------------

def diffusion_sinusoidal_pos_emb(
    x: jax.Array,
    dim: int,
    *,
    out_dtype=jnp.float32,
    phase_fold: bool = True,
    max_tile_rows: int | None = None,
) -> jax.Array:
    """Pallas-TPU equivalent of DiffusionSinusoidalPosEmb(dim).forward(x).

    x: (B,) timesteps. Returns (B, dim) in `out_dtype`.
    phase_fold=True halves transcendental work via cos(x)=sin(x+pi/2) (~1e-4 deviation
    for large timesteps); set False for bit-faithful sin/cos.
    """
    assert dim % 2 == 0 and dim >= 4, "dim must be even and >= 4"
    (b,) = x.shape
    assert b >= 1
    half = dim // 2
    item = jnp.dtype(out_dtype).itemsize
    row_align = 16 if item == 2 else 8     # bf16 packs 16 rows per sublane tile

    # Hoisted constant table (computed once in the wrapper; XLA constant-folds it).
    log_scale = math.log(10000.0) / (half - 1)
    freqs = jnp.exp(jnp.arange(half, dtype=jnp.float32) * -log_scale)   # (half,)
    freqs_dim = jnp.concatenate([freqs, freqs])                         # (dim,)

    compiler_params = pltpu.CompilerParams(
        dimension_semantics=("parallel",),
        vmem_limit_bytes=_VMEM_LIMIT_BYTES,
    )

    use_packed = (dim < _LANES) and (_LANES % dim == 0)

    if use_packed:
        # Lane-dense packed layout: k = 128 // dim logical rows per 128-lane output row.
        k = _LANES // dim
        b_pad = _round_up(b, k)
        xf = x.astype(jnp.float32)
        if b_pad != b:
            xf = jnp.pad(xf, (0, b_pad - b))            # pad so packed path always applies
        b_packed = b_pad // k
        x_packed = xf.reshape(b_packed, k)

        freqs_lane = jnp.tile(freqs_dim, k).reshape(1, _LANES)          # (1, 128)
        group_of_lane = np.arange(_LANES) // dim                        # (128,)
        onehot = jnp.asarray(
            (group_of_lane[None, :] == np.arange(k)[:, None]).astype(np.float32)
        )                                                               # (k, 128)
        f_mat = onehot * freqs_lane                                     # zero-padded block-diag
        lane_col = np.arange(_LANES) % dim
        if phase_fold:
            aux = jnp.asarray(
                np.where(lane_col >= half, _HALF_PI, 0.0).astype(np.float32)
            ).reshape(1, _LANES)
            kern = _packed_fold_kernel
        else:
            aux = jnp.asarray((lane_col < half).astype(np.float32)).reshape(1, _LANES)
            kern = _packed_exact_kernel

        tile = _pick_tile_rows(b_packed, _LANES * item, k * 4, _LANES * 4,
                               row_align, max_tile_rows)
        grid = (pl.cdiv(b_packed, tile),)

        out_packed = pl.pallas_call(
            kern,
            out_shape=jax.ShapeDtypeStruct((b_packed, _LANES), out_dtype),
            grid=grid,
            in_specs=[
                pl.BlockSpec((tile, k), lambda i: (i, 0)),
                pl.BlockSpec((k, _LANES), lambda i: (0, 0)),   # resident constant
                pl.BlockSpec((1, _LANES), lambda i: (0, 0)),   # resident constant
            ],
            out_specs=pl.BlockSpec((tile, _LANES), lambda i: (i, 0)),
            compiler_params=compiler_params,
        )(x_packed, f_mat, aux)
        out = out_packed.reshape(b_pad, dim)
        return out[:b] if b_pad != b else out

    # Plain path (dim >= 128, or a dim that does not divide 128).
    x2d = x.astype(jnp.float32).reshape(b, 1)
    tile = _pick_tile_rows(b, dim * item, 4, dim * 4, row_align, max_tile_rows)
    grid = (pl.cdiv(b, tile),)

    if phase_fold:
        f_full = freqs_dim.reshape(1, dim)
        p_full = jnp.concatenate(
            [jnp.zeros((half,), jnp.float32), jnp.full((half,), _HALF_PI, jnp.float32)]
        ).reshape(1, dim)
        return pl.pallas_call(
            _plain_fold_kernel,
            out_shape=jax.ShapeDtypeStruct((b, dim), out_dtype),
            grid=grid,
            in_specs=[
                pl.BlockSpec((tile, 1), lambda i: (i, 0)),
                pl.BlockSpec((1, dim), lambda i: (0, 0)),      # resident constant
                pl.BlockSpec((1, dim), lambda i: (0, 0)),      # resident constant
            ],
            out_specs=pl.BlockSpec((tile, dim), lambda i: (i, 0)),
            compiler_params=compiler_params,
        )(x2d, f_full, p_full)

    f_row = freqs.reshape(1, half)
    return pl.pallas_call(
        _plain_exact_kernel,
        out_shape=jax.ShapeDtypeStruct((b, dim), out_dtype),
        grid=grid,
        in_specs=[
            pl.BlockSpec((tile, 1), lambda i: (i, 0)),
            pl.BlockSpec((1, half), lambda i: (0, 0)),         # resident constant
        ],
        out_specs=pl.BlockSpec((tile, dim), lambda i: (i, 0)),
        compiler_params=compiler_params,
    )(x2d, f_row)


def _reference(x: jax.Array, dim: int) -> jax.Array:
    """Pure-JAX reference mirroring the PyTorch module exactly."""
    half = dim // 2
    log_scale = math.log(10000.0) / (half - 1)
    freqs = jnp.exp(jnp.arange(half, dtype=jnp.float32) * -log_scale)
    e = x.astype(jnp.float32)[:, None] * freqs[None, :]
    return jnp.concatenate([jnp.sin(e), jnp.cos(e)], axis=-1)


if __name__ == "__main__":
    key = jax.random.PRNGKey(0)

    # Case 1: module-typical small shape (B=8, dim=32) -> packed lane-dense path,
    # default phase-folded single sin (cos via sin(x+pi/2), ~1e-4 deviation).
    batch, dim = 8, 32
    x1 = jax.random.uniform(key, (batch,), dtype=jnp.float32) * 1000.0
    o1 = jax.block_until_ready(diffusion_sinusoidal_pos_emb(x1, dim))
    r1 = _reference(x1, dim)
    assert o1.shape == (batch, dim), o1.shape
    assert jnp.allclose(o1, r1, atol=1e-3, rtol=1e-3), "packed folded path mismatch"

    # Case 1b: exact packed path (no fold) at tight tolerance.
    o1e = jax.block_until_ready(diffusion_sinusoidal_pos_emb(x1, dim, phase_fold=False))
    assert jnp.allclose(o1e, r1, atol=1e-5, rtol=1e-5), "packed exact path mismatch"

    # Case 2: B not a multiple of k -> wrapper pads so the lane-dense path still applies.
    x2 = jax.random.uniform(jax.random.fold_in(key, 1), (13,), dtype=jnp.float32) * 1000.0
    o2 = jax.block_until_ready(diffusion_sinusoidal_pos_emb(x2, 32, phase_fold=False))
    r2 = _reference(x2, 32)
    assert o2.shape == (13, 32), o2.shape
    assert jnp.allclose(o2, r2, atol=1e-5, rtol=1e-5), "packed padded path mismatch"

    # Case 3: dim >= 128 plain path with a forced small tile so grid > 1 is exercised.
    x3 = jax.random.uniform(jax.random.fold_in(key, 2), (32,), dtype=jnp.float32) * 1000.0
    o3 = jax.block_until_ready(
        diffusion_sinusoidal_pos_emb(x3, 256, phase_fold=False, max_tile_rows=8))
    r3 = _reference(x3, 256)
    assert o3.shape == (32, 256), o3.shape
    assert jnp.allclose(o3, r3, atol=1e-5, rtol=1e-5), "plain exact gridded path mismatch"

    # Case 3b: phase-folded plain path (single contiguous store).
    o3f = jax.block_until_ready(diffusion_sinusoidal_pos_emb(x3, 256, max_tile_rows=8))
    assert jnp.allclose(o3f, r3, atol=1e-3, rtol=1e-3), "plain folded path mismatch"

    # Case 4: packed path with grid > 1 and bf16 output (16-row-aligned tiles).
    x4 = jax.random.uniform(jax.random.fold_in(key, 3), (128,), dtype=jnp.float32) * 1000.0
    o4 = jax.block_until_ready(
        diffusion_sinusoidal_pos_emb(x4, 32, out_dtype=jnp.bfloat16, max_tile_rows=16))
    r4 = _reference(x4, 32)
    assert o4.shape == (128, 32) and o4.dtype == jnp.bfloat16
    assert jnp.allclose(o4.astype(jnp.float32), r4, atol=2e-2, rtol=2e-2), "bf16 path mismatch"

    print("KERNEL_OK")
</pallas_src>

<mosaic_0001>
module attributes {stable_mosaic.version = 11 : i64} {
  func.func @_packed_fold_kernel(%arg0: i32, %arg1: memref<2x4xf32, #tpu.memory_space<vmem>>, %arg2: memref<4x128xf32, #tpu.memory_space<vmem>>, %arg3: memref<1x128xf32, #tpu.memory_space<vmem>>, %arg4: memref<2x128xf32, #tpu.memory_space<vmem>>) attributes {dimension_semantics = [#tpu.dimension_semantics<parallel>], iteration_bounds = array<i64: 1>, scalar_prefetch = 0 : i64, scratch_operands = 0 : i64, tpu.core_type = #tpu.core_type<tc>, window_params = [{transform_indices = @transform_0, window_bounds = array<i64: 2, 4>}, {pipeline_mode = #tpu.pipeline_mode<synchronous>, transform_indices = @transform_1, window_bounds = array<i64: 4, 128>}, {pipeline_mode = #tpu.pipeline_mode<synchronous>, transform_indices = @transform_2, window_bounds = array<i64: 1, 128>}, {transform_indices = @transform_3, window_bounds = array<i64: 2, 128>}]} {
    %c0 = arith.constant 0 : index
    %c0_0 = arith.constant 0 : index
    %0 = vector.load %arg1[%c0, %c0_0] : memref<2x4xf32, #tpu.memory_space<vmem>>, vector<2x4xf32>
    %1 = vector.extract_strided_slice %0 {offsets = [0, 0], sizes = [2, 1], strides = [1, 1]} : vector<2x4xf32> to vector<2x1xf32>
    %c0_1 = arith.constant 0 : index
    %c0_2 = arith.constant 0 : index
    %2 = vector.load %arg2[%c0_1, %c0_2] : memref<4x128xf32, #tpu.memory_space<vmem>>, vector<1x128xf32>
    %3 = vector.broadcast %1 : vector<2x1xf32> to vector<2x128xf32>
    %4 = vector.broadcast %2 : vector<1x128xf32> to vector<2x128xf32>
    %5 = arith.mulf %3, %4 : vector<2x128xf32>
    %6 = vector.extract_strided_slice %0 {offsets = [0, 1], sizes = [2, 1], strides = [1, 1]} : vector<2x4xf32> to vector<2x1xf32>
    %c1 = arith.constant 1 : index
    %c0_3 = arith.constant 0 : index
    %7 = vector.load %arg2[%c1, %c0_3] : memref<4x128xf32, #tpu.memory_space<vmem>>, vector<1x128xf32>
    %8 = vector.broadcast %6 : vector<2x1xf32> to vector<2x128xf32>
    %9 = vector.broadcast %7 : vector<1x128xf32> to vector<2x128xf32>
    %10 = arith.mulf %8, %9 : vector<2x128xf32>
    %11 = vector.extract_strided_slice %0 {offsets = [0, 2], sizes = [2, 1], strides = [1, 1]} : vector<2x4xf32> to vector<2x1xf32>
    %c2 = arith.constant 2 : index
    %c0_4 = arith.constant 0 : index
    %12 = vector.load %arg2[%c2, %c0_4] : memref<4x128xf32, #tpu.memory_space<vmem>>, vector<1x128xf32>
    %13 = vector.broadcast %11 : vector<2x1xf32> to vector<2x128xf32>
    %14 = vector.broadcast %12 : vector<1x128xf32> to vector<2x128xf32>
    %15 = arith.mulf %13, %14 : vector<2x128xf32>
    %16 = vector.extract_strided_slice %0 {offsets = [0, 3], sizes = [2, 1], strides = [1, 1]} : vector<2x4xf32> to vector<2x1xf32>
    %c3 = arith.constant 3 : index
    %c0_5 = arith.constant 0 : index
    %17 = vector.load %arg2[%c3, %c0_5] : memref<4x128xf32, #tpu.memory_space<vmem>>, vector<1x128xf32>
    %18 = vector.broadcast %16 : vector<2x1xf32> to vector<2x128xf32>
    %19 = vector.broadcast %17 : vector<1x128xf32> to vector<2x128xf32>
    %20 = arith.mulf %18, %19 : vector<2x128xf32>
    %21 = arith.addf %5, %10 : vector<2x128xf32>
    %22 = arith.addf %15, %20 : vector<2x128xf32>
    %23 = arith.addf %21, %22 : vector<2x128xf32>
    %c0_6 = arith.constant 0 : index
    %c0_7 = arith.constant 0 : index
    %24 = vector.load %arg3[%c0_6, %c0_7] : memref<1x128xf32, #tpu.memory_space<vmem>>, vector<1x128xf32>
    %25 = vector.broadcast %24 : vector<1x128xf32> to vector<2x128xf32>
    %26 = arith.addf %23, %25 : vector<2x128xf32>
    %27 = math.sin %26 : vector<2x128xf32>
    %c0_8 = arith.constant 0 : index
    %c0_9 = arith.constant 0 : index
    %28 = vector.load %arg4[%c0_8, %c0_9] : memref<2x128xf32, #tpu.memory_space<vmem>>, vector<2x128xf32>
    tpu.vector_store %arg4[%c0_8, %c0_9], %27 {strides = array<i32>} : memref<2x128xf32, #tpu.memory_space<vmem>>, vector<2x128xf32>,
    return
  }
  func.func @transform_0(%arg0: i32) -> (i32, i32) {
    %c0_i32 = arith.constant 0 : i32
    %c0_i32_0 = arith.constant 0 : i32
    return %arg0, %c0_i32 : i32, i32
  }
  func.func @transform_1(%arg0: i32) -> (i32, i32) {
    %c0_i32 = arith.constant 0 : i32
    %c0_i32_0 = arith.constant 0 : i32
    %c0_i32_1 = arith.constant 0 : i32
    return %c0_i32, %c0_i32_0 : i32, i32
  }
  func.func @transform_2(%arg0: i32) -> (i32, i32) {
    %c0_i32 = arith.constant 0 : i32
    %c0_i32_0 = arith.constant 0 : i32
    %c0_i32_1 = arith.constant 0 : i32
    return %c0_i32, %c0_i32_0 : i32, i32
  }
  func.func @transform_3(%arg0: i32) -> (i32, i32) {
    %c0_i32 = arith.constant 0 : i32
    %c0_i32_0 = arith.constant 0 : i32
    return %arg0, %c0_i32 : i32, i32
  }
}

</mosaic_0001>

<bundles_post_ra>
// kernel: tpu_custom_call.1
= control target key start
LH: loop header
LB: loop body
LE: loop exit
PB: predicated region body
PF: predicated region fallthrough
CT: control target
= control target key end

     0   :  { %8 = vsyncpa [#allocation3], 0  ;;  %s413_s0 = inlined_call_operand.hbm [shape: f32[2,4], index: 0, kind: input, shape index: {}]   ;;  %s414_s1 = inlined_call_operand.hbm [shape: f32[4,128], index: 1, kind: input, shape index: {}]   ;;  %s415_s2 = inlined_call_operand.vmem [shape: f32[1,128], index: 2, kind: input, shape index: {}]   ;;  %s416_s3 = inlined_call_operand.hbm [shape: f32[2,128], index: 3, kind: output, shape index: {}]  }
   0x1   :  { %9 = vsyncpa [#allocation6], 0 }
   0x2   :  { %10 = vsyncpa [#allocation4], 0  ;;  %s320_s12 = smov [#allocation2]   ;;  %s321_s14 = smov [#allocation5]  }
   0x3   :  { %s17_s13 = sshll.u32 %s320_s12, 4  ;;  %s27_s15 = sshll.u32 %s321_s14, 4  ;;  %s18_s13 = int_to_ptr.vmem [resolvable:$true] %s17_s13  ;;  %s28_s15 = int_to_ptr.vmem [resolvable:$true] %s27_s15 }
   0x4   :  { %s248_s18 = scalar_lea.hbm %s413_s0, 32 }
   0x5   :  { %p249_p0 = scmp.ne.s32.totalorder %s413_s0, %s248_s18  ;;  %p252_p1 = scmp.lt.u32.totalorder %s248_s18, %s413_s0 }
   0x7   :  { %p254_p2 = pnand %p252_p1, %p249_p0 }
   0x9   :  { %257 = shalt.err (!%p254_p2)
}
   0xa   :  { %s258_s23 = scalar_lea.vmem %s18_s13, 32  ;;  %p263_p4 = scmp.lt.s32.totalorder %s18_s13, %s18_s13 }
   0xb   :  { %p259_p3 = scmp.ne.s32.totalorder %s18_s13, %s258_s23  ;;  %p264_p5 = scmp.lt.s32.totalorder %s258_s23, %s258_s23 }
   0xd   :  { %p265_p6 = por %p264_p5, %p263_p4 }
   0xf   :  { %p266_p7 = pnand %p265_p6, %p259_p3 }
  0x11   :  { %269 = shalt.err (!%p266_p7)
}
  0x12   :  { %20 = dma.hbm_to_vmem [thread:$0]  %s413_s0, 32, %s18_s13, [#allocation3]  }
  0x13   :  { %s270_s28 = scalar_lea.hbm %s414_s1, 64 }
  0x14   :  { %p271_p8 = scmp.ne.s32.totalorder %s414_s1, %s270_s28  ;;  %p274_p9 = scmp.lt.u32.totalorder %s270_s28, %s414_s1 }
  0x16   :  { %p276_p10 = pnand %p274_p9, %p271_p8 }
  0x18   :  { %279 = shalt.err (!%p276_p10)
}
  0x19   :  { %s280_s6 = scalar_lea.vmem %s28_s15, 64  ;;  %p285_p12 = scmp.lt.s32.totalorder %s28_s15, %s28_s15 }
  0x1a   :  { %p281_p11 = scmp.ne.s32.totalorder %s28_s15, %s280_s6  ;;  %p286_p13 = scmp.lt.s32.totalorder %s280_s6, %s280_s6 }
  0x1c   :  { %p287_p0 = por %p286_p13, %p285_p12 }
  0x1e   :  { %p288_p1 = pnand %p287_p0, %p281_p11 }
  0x20   :  { %291 = shalt.err (!%p288_p1)
}
  0x21   :  { %30 = dma.hbm_to_vmem [thread:$0]  %s414_s1, 64, %s28_s15, [#allocation6]  }
  0x22   :  { %314 = dma.done.wait [#allocation3], 32  }
  0x23   :  { %315 = vsyncadd [#allocation3], 4294967264 }
  0x24   :  { %316 = dma.done.wait [#allocation6], 64  }
  0x25   :  { %317 = vsyncadd [#allocation6], 4294967232  ;;  %v322_v0 = vmov 2   ;;  %v323_v1 = vmov 0   ;;  %v39_v2 = vld [vmem:[#allocation2] sm:$0x3] }
  0x26   :  { %241 = vset.pattern.permute.xlu1 %v322_v0  ;;  %239 = vset.pattern.permute.xlu0 %v323_v1  ;;  %v324_v3 = vmov 3   ;;  %v325_v4 = vmov 1   ;;  %v215_v7 = vld [vmem:[#allocation5 + $0x2] ss:$0 sm:$0xff]  ;;  %v213_v8 = vld [vmem:[#allocation5] ss:$0 sm:$0xff] }
  0x27   :  { %63 = vperm.xlu1 %241, %v39_v2   ;;  %43 = vperm.xlu0 %239, %v39_v2   ;;  %v216_v9 = vld [vmem:[#allocation5 + $0x3] ss:$0 sm:$0xff]  ;;  %v214_v10 = vld [vmem:[#allocation5 + $0x1] ss:$0 sm:$0xff]  ;;  %v217_v19 = vld [vmem:[%s415_s2] ss:$0 sm:$0xff] }
  0x28   :  { %v326_v32 = vmov 683565275   ;;  %v327_v34 = vmov 2475754826   ;;  %v328_v37 = vmov 2131351028  }
  0x29   :  { %v329_v40 = vmov 2102212464   ;;  %v330_v43 = vmov 920167782   ;;  %v331_v46 = vmov 1326507024  }
  0x2a   :  { %s332_s2 = smov [#allocation7]  }
  0x2b   :  { %242 = vset.pattern.permute.xlu1 %v324_v3  ;;  %240 = vset.pattern.permute.xlu0 %v325_v4  ;;  %s203_s9 = sshll.u32 %s332_s2, 4  ;;  %s204_s9 = int_to_ptr.vmem [resolvable:$true] %s203_s9 }
  0x2c   :  { %73 = vperm.xlu1 %242, %v39_v2   ;;  %53 = vperm.xlu0 %240, %v39_v2   ;;  %s292_s10 = scalar_lea.vmem %s204_s9, 32  ;;  %p297_p3 = scmp.lt.s32.totalorder %s204_s9, %s204_s9 }
  0x2d   :  { %p293_p2 = scmp.ne.s32.totalorder %s204_s9, %s292_s10  ;;  %p298_p4 = scmp.lt.s32.totalorder %s292_s10, %s292_s10 }
  0x2f   :  { %p299_p5 = por %p298_p4, %p297_p3 }
  0x30   :  { %243 = vset.pattern.permute.xlu0 %v324_v3 }
  0x31   :  { %p300_p6 = pnand %p299_p5, %p293_p2 }
  0xa6   :  { %v64_v5 = vpop.permute.xlu1 %63  ;;  %v44_v6 = vpop.permute.xlu0 %43 }
  0xa7   :  { %v70_v13 = vmul.f32 %v215_v7, %v64_v5  ;;  %v50_v14 = vmul.f32 %v213_v8, %v44_v6 }
  0xab   :  { %v74_v11 = vpop.permute.xlu1 %73  ;;  %v54_v12 = vpop.permute.xlu0 %53 }
  0xac   :  { %v80_v15 = vmul.f32 %v216_v9, %v74_v11  ;;  %v60_v16 = vmul.f32 %v214_v10, %v54_v12 }
  0xae   :  { %v82_v17 = vadd.f32 %v80_v15, %v70_v13  ;;  %v81_v18 = vadd.f32 %v60_v16, %v50_v14 }
  0xb0   :  { %v83_v20 = vadd.f32 %v82_v17, %v81_v18 }
  0xb2   :  { %v380_v21 = vadd.f32 %v217_v19, %v83_v20 }
  0xb4   :  { %v95_v22 = vand.u32 2139095040, %v380_v21  ;;  %v92_v26 = vand.u32 2147483647, %v380_v21  ;;  %vm94_vm7 = vcmp.lt.s32.totalorder %v380_v21, 0  ;;  %vm184_vm12 = vweird.f32 %v380_v21 }
  0xb6   :  { %v96_v23 = vshrl.u32 %v95_v22, 23  ;;  %v99_v30 = vand.u32 8388607, %v92_v26  ;;  %vm93_vm8 = vcmp.le.f32.partialorder %v92_v26, 0.7853982 }
  0xb8   :  { %v218_v24 = vadd.s32 4294967169, %v96_v23  ;;  %v100_v48 = vor.u32 8388608, %v99_v30 }
  0xba   :  { %v102_v25 = vadd.s32 1, %v218_v24  ;;  %v140_v62 = vshll.u32 %v100_v48, 8 }
  0xbc   :  { %vm103_vm0 = vcmp.gt.s32.totalorder %v102_v25, 0 }
  0xbd   :  { %v104_v27 = vsel %vm103_vm0, %v102_v25, 0 }
  0xbe   :  { %v106_v28 = vand.u32 31, %v104_v27  ;;  %v105_v31 = vshrl.u32 %v104_v27, 5 }
  0xc0   :  { %v107_v29 = vsub.s32 32, %v106_v28  ;;  %v109_v33 = vshll.u32 %v326_v32, %v106_v28  ;;  %v112_v35 = vshll.u32 %v327_v34, %v106_v28  ;;  %v115_v39 = vshll.u32 %v328_v37, %v106_v28 }
  0xc1   :  { %v118_v42 = vshll.u32 %v329_v40, %v106_v28  ;;  %v121_v45 = vshll.u32 %v330_v43, %v106_v28  ;;  %vm124_vm1 = vcmp.lt.s32.totalorder %v105_v31, 1  ;;  %vm127_vm2 = vcmp.lt.s32.totalorder %v105_v31, 4 }
  0xc2   :  { %v110_v36 = vshrl.u32 %v327_v34, %v107_v29  ;;  %v113_v38 = vshrl.u32 %v328_v37, %v107_v29  ;;  %v116_v41 = vshrl.u32 %v329_v40, %v107_v29  ;;  %v119_v44 = vshrl.u32 %v330_v43, %v107_v29 }
  0xc3   :  { %v122_v47 = vshrl.u32 %v331_v46, %v107_v29  ;;  %v108_v57 = vshrl.u32 %v326_v32, %v107_v29  ;;  %vm126_vm3 = vcmp.lt.s32.totalorder %v105_v31, 3  ;;  %vm125_vm4 = vcmp.lt.s32.totalorder %v105_v31, 2 }
  0xc4   :  { %v111_v49 = vor.u32 %v110_v36, %v109_v33  ;;  %v114_v50 = vor.u32 %v113_v38, %v112_v35  ;;  %v117_v51 = vor.u32 %v116_v41, %v115_v39  ;;  %v120_v52 = vor.u32 %v119_v44, %v118_v42 }
  0xc5   :  { %v123_v53 = vor.u32 %v122_v47, %v121_v45 }
  0xc6   :  { %v129_v54 = vsel %vm127_vm2, %v117_v51, 2102212464  ;;  %v132_v55 = vsel %vm124_vm1, %v111_v49, %v114_v50  ;;  %v136_v56 = vsel %vm124_vm1, %v114_v50, %v117_v51  ;;  %v133_v58 = vsel %vm127_vm2, %v120_v52, 920167782 }
  0xc7   :  { %v137_v59 = vsel %vm127_vm2, %v123_v53, 1326507024  ;;  %v134_v60 = vsel %vm126_vm3, %v117_v51, %v133_v58  ;;  %v128_v63 = vsel %vm124_vm1, %v108_v57, %v111_v49  ;;  %v130_v0 = vsel %vm126_vm3, %v114_v50, %v129_v54 }
  0xc8   :  { %v138_v61 = vsel %vm126_vm3, %v120_v52, %v137_v59  ;;  %v135_v1 = vsel %vm125_vm4, %v132_v55, %v134_v60  ;;  %v131_v7 = vsel %vm125_vm4, %v128_v63, %v130_v0 }
  0xc9   :  { %v139_v2 = vsel %vm125_vm4, %v136_v56, %v138_v61  ;;  %v389_v5 = vmul.u32.u64.low %v140_v62, %v135_v1  ;;  %v390_v6 = vmul.u32.u64.high %v140_v62, %v135_v1, %v389_v5  ;;  %v147_v9 = vmul.u32 %v140_v62, %v131_v7 }
  0xca   :  { %v386_v3 = vmul.u32.u64.low %v140_v62, %v139_v2  ;;  %v387_v4 = vmul.u32.u64.high %v140_v62, %v139_v2, %v386_v3 }
  0xcb   :  { %v150_v8 = vadd.s32 1, %v390_v6 }
  0xcc   :  { %vm149_vm5 = vc.u32 %v387_v4, %v389_v5  ;;  %v148_v22 = vadd.s32 %v389_v5, %v387_v4 }
  0xcd   :  { %v151_v10 = vsel %vm149_vm5, %v150_v8, %v390_v6 }
  0xce   :  { %v152_v11 = vadd.s32 %v151_v10, %v147_v9 }
  0xd0   :  { %v153_v12 = vadd.s32 536870912, %v152_v11 }
  0xd2   :  { %v154_v13 = vshrl.u32 %v153_v12, 30 }
  0xd4   :  { %v155_v14 = vshll.u32 %v154_v13, 30  ;;  %v178_v35 = vsub.s32 4, %v154_v13 }
  0xd6   :  { %v156_v15 = vsub.s32 %v152_v11, %v155_v14  ;;  %v179_v38 = vsel %vm94_vm7, %v178_v35, %v154_v13 }
  0xd7   :  { %v181_v40 = vsel %vm93_vm8, 0, %v179_v38 }
  0xd8   :  { %v158_v16 = vsub.s32 0, %v156_v15  ;;  %v185_v41 = vadd.s32 3, %v181_v40 }
  0xda   :  { %v219_v17 = vmin.u32 %v158_v16, %v156_v15  ;;  %v186_v42 = vand.u32 3, %v185_v41 }
  0xdc   :  { %v160_v18 = vclz %v219_v17  ;;  %vm191_vm9 = vcmp.eq.s32.totalorder %v186_v42, 2  ;;  %vm188_vm10 = vcmp.eq.s32.totalorder %v186_v42, 0  ;;  %vm187_vm11 = vcmp.lt.s32.totalorder %v186_v42, 2 }
  0xde   :  { %v220_v19 = vadd.s32 4294967294, %v160_v18 }
  0xe0   :  { %vm221_vm6 = vcmp.lt.s32.totalorder %v220_v19, 0 }
  0xe1   :  { %v163_v20 = vsel %vm221_vm6, 0, %v220_v19 }
  0xe2   :  { %v164_v23 = vsub.s32 32, %v163_v20  ;;  %v168_v24 = vsub.s32 4294967266, %v163_v20  ;;  %v165_v25 = vshll.u32 %v156_v15, %v163_v20 }
  0xe4   :  { %v166_v27 = vshrl.u32 %v148_v22, %v164_v23  ;;  %v169_v28 = vadd.s32 127, %v168_v24 }
  0xe6   :  { %v167_v29 = vor.u32 %v166_v27, %v165_v25  ;;  %v170_v30 = vshll.u32 %v169_v28, 23 }
  0xe8   :  { %v171_v31 = vor.u32 4788187, %v170_v30  ;;  %v174_v33 = vcvt.s32.f32 %v167_v29 }
  0xea   :  { %v172_v32 = vand.u32 2147483647, %v171_v31 }
  0xec   :  { %v175_v34 = vmul.f32 %v174_v33, %v172_v32 }
  0xee   :  { %v176_v36 = vxor.u32 2147483648, %v175_v34 }
  0xf0   :  { %v177_v37 = vsel %vm94_vm7, %v176_v36, %v175_v34 }
  0xf1   :  { %v180_v39 = vsel %vm93_vm8, %v380_v21, %v177_v37 }
  0xf2   :  { %244 = vcosq.f32 %v180_v39 }
  0xf3   :  { %246 = vsinq.f32 %v180_v39 }
  0xfc   :  { %v245_v43 = vpop.eup %244 }
  0xfd   :  { %v247_v44 = vpop.eup %246  ;;  %v192_v45 = vxor.u32 2147483648, %v245_v43 }
  0xfe   :  { %v189_v46 = vxor.u32 2147483648, %v247_v44 }
  0xff   :  { %v193_v47 = vsel %vm191_vm9, %v192_v45, %v247_v44 }
 0x100   :  { %v190_v26 = vsel %vm188_vm10, %v245_v43, %v189_v46 }
 0x101   :  { %v194_v48 = vsel %vm187_vm11, %v190_v26, %v193_v47 }
 0x102   :  { %v195_v49 = vsel %vm184_vm12, nan, %v194_v48 }
 0x103   :  { %196 = vst [vmem:[#allocation7] sm:$0x3] %v195_v49 }
 0x104   :  { %303 = shalt.err (!%p300_p6)
}
 0x105   :  { %s304_s13 = scalar_lea.hbm %s416_s3, 32 }
 0x106   :  { %p305_p7 = scmp.ne.s32.totalorder %s416_s3, %s304_s13  ;;  %p308_p8 = scmp.lt.u32.totalorder %s304_s13, %s416_s3 }
 0x108   :  { %p310_p9 = pnand %p308_p8, %p305_p7 }
 0x10a   :  { %313 = shalt.err (!%p310_p9)
}
 0x10b   :  { %206 = dma.vmem_to_hbm [thread:$0]  %s204_s9, 32, %s416_s3, [#allocation4]  }
 0x10c   :  { %318 = dma.done.wait [#allocation4], 32  }
 0x10d   :  { %319 = vsyncadd [#allocation4], 4294967264 }
 0x10e   :  { %210 = vsyncpa [#allocation3], 1 }
 0x10f   :  { %211 = vsyncpa [#allocation6], 1 }
 0x110   :  { %212 = vsyncpa [#allocation4], 1 }

</bundles_post_ra>
